<compile_context>
chip_gen: v7x
topology: tpu7x:2x2x1
jax: 0.10.0
libtpu: 0.0.40
codegen_flags: <defaults>
</compile_context>

<pallas_src>
import functools

import jax
import jax.numpy as jnp
from jax import lax
from jax.experimental import pallas as pl
from jax.experimental.pallas import tpu as pltpu


# ---------------------------------------------------------------------------
# Compiler params / VMEM budget
# ---------------------------------------------------------------------------
def _default_vmem_limit():
    try:
        info = pltpu.get_tpu_info()
        cap = getattr(info, "vmem_capacity_bytes", None)
        if cap:
            # leave headroom: 3/4 of physical, capped at 96 MiB
            return int(min(cap * 3 // 4, 96 * 1024 * 1024))
    except Exception:
        pass
    return 32 * 1024 * 1024


_VMEM_LIMIT = _default_vmem_limit()


def _cparams(rank=1):
    return pltpu.CompilerParams(
        dimension_semantics=("parallel",) * rank,
        vmem_limit_bytes=_VMEM_LIMIT)


# ---------------------------------------------------------------------------
# Small helpers (glue)
# ---------------------------------------------------------------------------
def _round_up(x, m):
    return (x + m - 1) // m * m


def _m_tiling(m):
    """Pick (padded_m, tile_m) for the matmul M dimension.

    Prefer a tile that divides M exactly (no pad copy, no boundary blocks);
    cap tiles at 512 rows so large matmuls get a multi-step pipelined grid.
    """
    if m % 8 == 0 and m > 512:
        for tm in range(512, 7, -8):
            if m % tm == 0:
                return m, tm
    if m <= 512:
        return m, m                       # single full block (always legal)
    mp = _round_up(m, 256)
    return mp, 256                        # bf16 row pad + 256-row tiles


def _n_tile(n_pad):
    for tn in (512, 256):
        if n_pad % tn == 0:
            return tn
    return 128


def _make_phases(x, kh, kw, pad, fill, ow_pad=None):
    """Stride-2 parity-phase decomposition: every tap becomes an unstrided
    static slice of the returned (N, 4*ph_h, ph_w, C) tensor."""
    n, h, w, c = x.shape
    oh = (h + 2 * pad - kh) // 2 + 1
    ow = (w + 2 * pad - kw) // 2 + 1
    if ow_pad is None:
        ow_pad = ow
    hh, hw = (kh - 1) // 2, (kw - 1) // 2
    ph_h, ph_w = oh + hh, ow_pad + hw
    need_h, need_w = 2 * ph_h, 2 * ph_w
    xp = jnp.pad(x, ((0, 0), (pad, need_h - h - pad),
                     (pad, need_w - w - pad), (0, 0)),
                 constant_values=fill)
    phases = [xp[:, p::2, q::2, :][:, :ph_h, :ph_w, :]
              for p in (0, 1) for q in (0, 1)]
    xph = jnp.concatenate(phases, axis=1)
    taps = tuple((((di % 2) * 2 + (dj % 2)) * ph_h + di // 2, dj // 2)
                 for di in range(kh) for dj in range(kw))
    return xph, taps, oh, ow


def _im2col(x, kh, kw, stride, pad):
    """Dense-conv im2col (only used for the tiny 3-channel stem conv0)."""
    n, h, w, c = x.shape
    if pad > 0:
        x = jnp.pad(x, ((0, 0), (pad, pad), (pad, pad), (0, 0)))
    hp, wp = h + 2 * pad, w + 2 * pad
    oh = (hp - kh) // stride + 1
    ow = (wp - kw) // stride + 1
    cols = []
    for di in range(kh):
        for dj in range(kw):
            sl = x[:, di:di + (oh - 1) * stride + 1:stride,
                      dj:dj + (ow - 1) * stride + 1:stride, :]
            cols.append(sl.reshape(n * oh * ow, c))
    return jnp.concatenate(cols, axis=-1), oh, ow


# ---------------------------------------------------------------------------
# Pallas kernels
# ---------------------------------------------------------------------------
def _matmul_affine_kernel(a_ref, b_ref, s_ref, t_ref, o_ref, *,
                          relu_in, relu_out):
    a = a_ref[...]
    if relu_in:
        a = jnp.maximum(a, 0)
    y = jnp.dot(a, b_ref[...], preferred_element_type=jnp.float32)
    y = y * s_ref[...] + t_ref[...]
    if relu_out:
        y = jnp.maximum(y, 0.0)
    o_ref[...] = y.astype(o_ref.dtype)


def _sep_stage_kernel(*refs, taps, oh, ow, ow_pad, pad, h, w,
                      relu_in, relu_out, has_res, prepadded):
    """Fused (ReLU) -> depthwise conv -> pointwise matmul (bf16 MXU) -> BN
    -> (ReLU) -> (+residual), one batch element per grid step."""
    x_ref, wdw_ref, wpw_ref, s_ref, t_ref = refs[:5]
    idx = 5
    res_ref = None
    if has_res:
        res_ref = refs[idx]
        idx += 1
    o_ref = refs[idx]

    if prepadded:
        def tap(ro, co):
            return x_ref[0, ro:ro + oh, co:co + ow_pad, :]
    else:
        pad_ref = refs[idx + 1]
        pad_ref[...] = jnp.zeros(pad_ref.shape, pad_ref.dtype)
        pad_ref[pad:pad + h, pad:pad + w, :] = x_ref[0]

        def tap(ro, co):
            return pad_ref[ro:ro + oh, co:co + ow_pad, :]

    acc = None
    for ti, (ro, co) in enumerate(taps):
        xt = tap(ro, co)
        if relu_in:
            xt = jnp.maximum(xt, 0)
        contrib = xt.astype(jnp.float32) * wdw_ref[ti]
        acc = contrib if acc is None else acc + contrib

    # ow_pad is a multiple of 8, so this reshape is a free (aligned) collapse.
    flat = acc.reshape(oh * ow_pad, acc.shape[-1]).astype(jnp.bfloat16)
    y = jnp.dot(flat, wpw_ref[...], preferred_element_type=jnp.float32)
    y = y * s_ref[...] + t_ref[...]
    if relu_out:
        y = jnp.maximum(y, 0.0)
    y = y.reshape(oh, ow_pad, y.shape[-1])[:, :ow, :]
    if has_res:
        y = y + res_ref[0].astype(jnp.float32)
    o_ref[0] = y.astype(o_ref.dtype)


def _pool_kernel(*refs, taps, oh, ow, pad, h, w, stride, k, op,
                 relu_in, out_scale, has_res, prepadded):
    x_ref = refs[0]
    idx = 1
    res_ref = None
    if has_res:
        res_ref = refs[idx]
        idx += 1
    o_ref = refs[idx]

    if prepadded:
        def tap(ro, co):
            return x_ref[0, ro:ro + oh, co:co + ow, :]
    else:
        pad_ref = refs[idx + 1]
        fill = 0.0 if op == "avg" else -float("inf")
        pad_ref[...] = jnp.full(pad_ref.shape, fill, pad_ref.dtype)
        pad_ref[pad:pad + h, pad:pad + w, :] = x_ref[0]

        def tap(ro, co):
            return pad_ref[ro:ro + oh, co:co + ow, :]

    if op == "max":
        acc = tap(*taps[0])
        for (ro, co) in taps[1:]:
            acc = jnp.maximum(acc, tap(ro, co))
        o_ref[0] = acc.astype(o_ref.dtype)
        return

    acc = None
    for (ro, co) in taps:
        xt = tap(ro, co)
        if relu_in:
            xt = jnp.maximum(xt, 0)
        xt = xt.astype(jnp.float32)
        acc = xt if acc is None else acc + xt

    # count_include_pad=False window counts from static output positions.
    ri = lax.broadcasted_iota(jnp.int32, (oh, ow, 1), 0) * stride - pad
    ci = lax.broadcasted_iota(jnp.int32, (oh, ow, 1), 1) * stride - pad
    rcnt = jnp.minimum(ri + k, h) - jnp.maximum(ri, 0)
    ccnt = jnp.minimum(ci + k, w) - jnp.maximum(ci, 0)
    inv = jnp.float32(out_scale) / (rcnt * ccnt).astype(jnp.float32)
    out = acc * inv
    if has_res:
        out = out + res_ref[0].astype(jnp.float32)
    o_ref[0] = out.astype(o_ref.dtype)


# ---------------------------------------------------------------------------
# Pallas op wrappers
# ---------------------------------------------------------------------------
@functools.partial(jax.jit, static_argnames=("relu_in", "relu_out"))
def matmul_affine(a, b, scale, shift, *, relu_in=False, relu_out=False):
    """out = (relu(a) if relu_in else a) @ b * scale + shift  (bf16 out)."""
    m, k = a.shape
    n = b.shape[1]
    n_pad = _round_up(n, 128)
    mp, tm = _m_tiling(m)
    a = a.astype(jnp.bfloat16)
    if mp != m:
        a = jnp.pad(a, ((0, mp - m), (0, 0)))
    b = b.astype(jnp.bfloat16)
    s2 = scale.astype(jnp.float32).reshape(1, n)
    t2 = shift.astype(jnp.float32).reshape(1, n)
    if n_pad != n:
        b = jnp.pad(b, ((0, 0), (0, n_pad - n)))
        s2 = jnp.pad(s2, ((0, 0), (0, n_pad - n)))
        t2 = jnp.pad(t2, ((0, 0), (0, n_pad - n)))
    tn = _n_tile(n_pad)
    out = pl.pallas_call(
        functools.partial(_matmul_affine_kernel, relu_in=relu_in,
                          relu_out=relu_out),
        out_shape=jax.ShapeDtypeStruct((mp, n_pad), jnp.bfloat16),
        grid=(mp // tm, n_pad // tn),
        in_specs=[pl.BlockSpec((tm, k), lambda i, j: (i, 0)),
                  pl.BlockSpec((k, tn), lambda i, j: (0, j)),
                  pl.BlockSpec((1, tn), lambda i, j: (0, j)),
                  pl.BlockSpec((1, tn), lambda i, j: (0, j))],
        out_specs=pl.BlockSpec((tm, tn), lambda i, j: (i, j)),
        compiler_params=_cparams(2),
    )(a, b, s2, t2)
    if mp != m:
        out = out[:m]
    return out[:, :n] if n_pad != n else out


@functools.partial(jax.jit,
                   static_argnames=("stride", "pad", "relu_in", "relu_out"))
def sep_stage(x, w_dw, w_pw, scale, shift, *, stride, pad,
              relu_in=False, relu_out=False, res=None):
    """One separable-conv stage, fully fused in a single pallas_call."""
    x = x.astype(jnp.bfloat16)
    n, h, w, c = x.shape
    kh, kw, _ = w_dw.shape
    oh = (h + 2 * pad - kh) // stride + 1
    ow = (w + 2 * pad - kw) // stride + 1
    ow_pad = _round_up(ow, 8)
    cout = w_pw.shape[1]
    wdw = w_dw.reshape(kh * kw, c).astype(jnp.float32)
    wpw = w_pw.astype(jnp.bfloat16)
    s2 = scale.astype(jnp.float32).reshape(1, cout)
    t2 = shift.astype(jnp.float32).reshape(1, cout)
    has_res = res is not None

    if stride == 1:
        xin = x
        taps = tuple((di, dj) for di in range(kh) for dj in range(kw))
        prepadded = False
        scratch = [pltpu.VMEM((h + 2 * pad, ow_pad + 2 * pad, c),
                              jnp.bfloat16)]
    else:
        xin, taps, oh, ow = _make_phases(x, kh, kw, pad, 0.0, ow_pad=ow_pad)
        prepadded = True
        scratch = []
    rh, pw_ = xin.shape[1], xin.shape[2]

    in_specs = [pl.BlockSpec((1, rh, pw_, c), lambda i: (i, 0, 0, 0)),
                pl.BlockSpec((kh * kw, c), lambda i: (0, 0)),
                pl.BlockSpec((c, cout), lambda i: (0, 0)),
                pl.BlockSpec((1, cout), lambda i: (0, 0)),
                pl.BlockSpec((1, cout), lambda i: (0, 0))]
    args = [xin, wdw, wpw, s2, t2]
    if has_res:
        in_specs.append(pl.BlockSpec((1, oh, ow, cout),
                                     lambda i: (i, 0, 0, 0)))
        args.append(res.astype(jnp.bfloat16))

    out = pl.pallas_call(
        functools.partial(_sep_stage_kernel, taps=taps, oh=oh, ow=ow,
                          ow_pad=ow_pad, pad=pad, h=h, w=w,
                          relu_in=relu_in, relu_out=relu_out,
                          has_res=has_res, prepadded=prepadded),
        out_shape=jax.ShapeDtypeStruct((n, oh, ow, cout), jnp.bfloat16),
        grid=(n,),
        in_specs=in_specs,
        out_specs=pl.BlockSpec((1, oh, ow, cout), lambda i: (i, 0, 0, 0)),
        scratch_shapes=scratch,
        compiler_params=_cparams(1),
    )(*args)
    return out


def _pool_call(x, *, k, stride, pad, op, relu_in=False, out_scale=1.0,
               res=None):
    x = x.astype(jnp.bfloat16)
    n, h, w, c = x.shape
    oh = (h + 2 * pad - k) // stride + 1
    ow = (w + 2 * pad - k) // stride + 1
    fill = -jnp.inf if op == "max" else 0.0
    if stride == 2:
        xin, taps, oh, ow = _make_phases(x, k, k, pad, fill)
        prepadded = True
        scratch = []
    elif pad == 0:
        xin = x
        taps = tuple((di, dj) for di in range(k) for dj in range(k))
        prepadded = True
        scratch = []
    else:
        xin = x
        taps = tuple((di, dj) for di in range(k) for dj in range(k))
        prepadded = False
        scratch = [pltpu.VMEM((h + 2 * pad, w + 2 * pad, c), jnp.bfloat16)]
    rh, pw_ = xin.shape[1], xin.shape[2]
    has_res = res is not None
    in_specs = [pl.BlockSpec((1, rh, pw_, c), lambda i: (i, 0, 0, 0))]
    args = [xin]
    if has_res:
        in_specs.append(pl.BlockSpec((1, oh, ow, c), lambda i: (i, 0, 0, 0)))
        args.append(res.astype(jnp.bfloat16))
    out = pl.pallas_call(
        functools.partial(_pool_kernel, taps=taps, oh=oh, ow=ow, pad=pad,
                          h=h, w=w, stride=stride, k=k, op=op,
                          relu_in=relu_in, out_scale=float(out_scale),
                          has_res=has_res, prepadded=prepadded),
        out_shape=jax.ShapeDtypeStruct((n, oh, ow, c), jnp.bfloat16),
        grid=(n,),
        in_specs=in_specs,
        out_specs=pl.BlockSpec((1, oh, ow, c), lambda i: (i, 0, 0, 0)),
        scratch_shapes=scratch,
        compiler_params=_cparams(1),
    )(*args)
    return out


@functools.partial(jax.jit, static_argnames=("k", "stride", "pad"))
def max_pool(x, *, k, stride, pad):
    """MaxPool2d(k, stride, pad): implicit padding is -inf (PyTorch)."""
    return _pool_call(x, k=k, stride=stride, pad=pad, op="max")


@functools.partial(jax.jit,
                   static_argnames=("k", "stride", "pad", "relu_in",
                                    "out_scale"))
def avg_pool(x, *, k, stride, pad, relu_in=False, out_scale=1.0, res=None):
    """AvgPool2d(k, stride, pad, count_include_pad=False) [* scale] [+ res]."""
    return _pool_call(x, k=k, stride=stride, pad=pad, op="avg",
                      relu_in=relu_in, out_scale=out_scale, res=res)


# ---------------------------------------------------------------------------
# NASNet building blocks
# ---------------------------------------------------------------------------
def apply_pw_bn(x, w, scale, shift, relu_in=False):
    n, h, ww, c = x.shape
    y = matmul_affine(x.reshape(n * h * ww, c), w, scale, shift,
                      relu_in=relu_in)
    return y.reshape(n, h, ww, w.shape[1])


def conv_1x1_bn(p, x):
    """nn.Sequential(ReLU, Conv2d 1x1 bias=False, BatchNorm2d), fused."""
    return apply_pw_bn(x, p['w'], p['scale'], p['shift'], relu_in=True)


def conv2d_bn(x, w, scale, shift, *, stride, pad, relu_in=False):
    """Dense conv via im2col + fused matmul/BN kernel.  w: (kh,kw,cin,cout)."""
    n, h, wd, cin = x.shape
    kh, kw, _, cout = w.shape
    if kh == 1 and kw == 1 and stride == 1 and pad == 0:
        return apply_pw_bn(x, w.reshape(cin, cout), scale, shift,
                           relu_in=relu_in)
    a, oh, ow = _im2col(x.astype(jnp.bfloat16), kh, kw, stride, pad)
    y = matmul_affine(a, w.reshape(kh * kw * cin, cout), scale, shift,
                      relu_in=relu_in)
    return y.reshape(n, oh, ow, cout)


def branch_separables(p, x, *, stride, z_pad=0, res=None):
    """relu -> [zero-pad] -> sep1 -> [crop] -> bn1 -> relu -> sep2 -> bn2 [+res].
    Each separable stage is one fused Pallas kernel; the middle ReLU is the
    epilogue of stage 1 and the branch-add is the epilogue of stage 2."""
    k1 = p['dw1'].shape[0]
    if z_pad:
        x = jnp.pad(x, ((0, 0), (z_pad, 0), (z_pad, 0), (0, 0)))
    h = sep_stage(x, p['dw1'], p['pw1'], p['bn1_s'], p['bn1_t'],
                  stride=stride, pad=k1 // 2, relu_in=True, relu_out=True)
    if z_pad:
        h = h[:, 1:, 1:, :]
    k2 = p['dw2'].shape[0]
    h = sep_stage(h, p['dw2'], p['pw2'], p['bn2_s'], p['bn2_t'],
                  stride=1, pad=k2 // 2, relu_in=False, relu_out=False,
                  res=res)
    return h


def reduce_prev_path(p, x_prev):
    """FirstCell / CellStem1 previous-layer path (BN folded into the 1x1s)."""
    x1 = x_prev[:, ::2, ::2, :]
    n, h1, w1, c = x1.shape
    p1 = matmul_affine(x1.reshape(-1, c), p['p1_w'], p['s_a'], p['t_a'],
                       relu_in=True).reshape(n, h1, w1, -1)
    xp = jnp.pad(x_prev, ((0, 0), (0, 1), (0, 1), (0, 0)))[:, 1:, 1:, :]
    x2 = xp[:, ::2, ::2, :]
    n, h2, w2, c = x2.shape
    p2 = matmul_affine(x2.reshape(-1, c), p['p2_w'], p['s_b'], p['t_b'],
                       relu_in=True).reshape(n, h2, w2, -1)
    return jnp.concatenate([p1, p2], axis=-1)


def max_pool_pad(x):
    xp = jnp.pad(x, ((0, 0), (1, 0), (1, 0), (0, 0)))
    return max_pool(xp, k=3, stride=2, pad=1)[:, 1:, 1:, :]


def avg_pool_pad(x):
    xp = jnp.pad(x, ((0, 0), (1, 0), (1, 0), (0, 0)))
    return avg_pool(xp, k=3, stride=2, pad=1)[:, 1:, 1:, :]


def cell_stem0(p, x):
    x1 = conv_1x1_bn(p['conv_1x1'], x)
    c0 = branch_separables(p['c0r'], x, stride=2,
                           res=branch_separables(p['c0l'], x1, stride=2))
    mp_x1 = max_pool(x1, k=3, stride=2, pad=1)
    c1 = branch_separables(p['c1r'], x, stride=2, res=mp_x1)
    c2 = branch_separables(p['c2r'], x, stride=2,
                           res=avg_pool(x1, k=3, stride=2, pad=1))
    c3 = avg_pool(c0, k=3, stride=1, pad=1, res=c1)
    c4 = branch_separables(p['c4l'], c0, stride=1, res=mp_x1)
    return jnp.concatenate([c1, c2, c3, c4], axis=-1)


def cell_stem1(p, x_conv0, x_stem_0):
    x_left = conv_1x1_bn(p['conv_1x1'], x_stem_0)
    x_right = reduce_prev_path(p['path'], x_conv0)
    c0 = branch_separables(p['c0r'], x_right, stride=2,
                           res=branch_separables(p['c0l'], x_left, stride=2))
    mp_left = max_pool(x_left, k=3, stride=2, pad=1)
    c1 = branch_separables(p['c1r'], x_right, stride=2, res=mp_left)
    c2 = branch_separables(p['c2r'], x_right, stride=2,
                           res=avg_pool(x_left, k=3, stride=2, pad=1))
    c3 = avg_pool(c0, k=3, stride=1, pad=1, res=c1)
    c4 = branch_separables(p['c4l'], c0, stride=1, res=mp_left)
    return jnp.concatenate([c1, c2, c3, c4], axis=-1)


def first_cell(p, x, x_prev):
    x_left = reduce_prev_path(p['path'], x_prev)
    x_right = conv_1x1_bn(p['conv_1x1'], x)
    c0 = branch_separables(p['c0r'], x_left, stride=1,
                           res=branch_separables(p['c0l'], x_right, stride=1))
    c1 = branch_separables(p['c1r'], x_left, stride=1,
                           res=branch_separables(p['c1l'], x_left, stride=1))
    c2 = avg_pool(x_right, k=3, stride=1, pad=1, res=x_left)
    c3 = avg_pool(x_left, k=3, stride=1, pad=1, out_scale=2.0)
    c4 = branch_separables(p['c4l'], x_right, stride=1, res=x_right)
    return jnp.concatenate([x_left, c0, c1, c2, c3, c4], axis=-1)


def normal_cell(p, x, x_prev):
    x_left = conv_1x1_bn(p['conv_prev_1x1'], x_prev)
    x_right = conv_1x1_bn(p['conv_1x1'], x)
    c0 = branch_separables(p['c0r'], x_left, stride=1,
                           res=branch_separables(p['c0l'], x_right, stride=1))
    c1 = branch_separables(p['c1r'], x_left, stride=1,
                           res=branch_separables(p['c1l'], x_left, stride=1))
    c2 = avg_pool(x_right, k=3, stride=1, pad=1, res=x_left)
    c3 = avg_pool(x_left, k=3, stride=1, pad=1, out_scale=2.0)
    c4 = branch_separables(p['c4l'], x_right, stride=1, res=x_right)
    return jnp.concatenate([x_left, c0, c1, c2, c3, c4], axis=-1)


def reduction_cell0(p, x, x_prev):
    x_left = conv_1x1_bn(p['conv_prev_1x1'], x_prev)
    x_right = conv_1x1_bn(p['conv_1x1'], x)
    c0 = branch_separables(
        p['c0r'], x_left, stride=2, z_pad=1,
        res=branch_separables(p['c0l'], x_right, stride=2, z_pad=1))
    mpp_right = max_pool_pad(x_right)
    c1 = branch_separables(p['c1r'], x_left, stride=2, z_pad=1, res=mpp_right)
    c2 = branch_separables(p['c2r'], x_left, stride=2, z_pad=1,
                           res=avg_pool_pad(x_right))
    c3 = avg_pool(c0, k=3, stride=1, pad=1, res=c1)
    c4 = branch_separables(p['c4l'], c0, stride=1, z_pad=1, res=mpp_right)
    return jnp.concatenate([c1, c2, c3, c4], axis=-1)


def reduction_cell1(p, x, x_prev):
    x_left = conv_1x1_bn(p['conv_prev_1x1'], x_prev)
    x_right = conv_1x1_bn(p['conv_1x1'], x)
    c0 = branch_separables(p['c0r'], x_left, stride=2,
                           res=branch_separables(p['c0l'], x_right, stride=2))
    mp_right = max_pool(x_right, k=3, stride=2, pad=1)
    c1 = branch_separables(p['c1r'], x_left, stride=2, res=mp_right)
    c2 = branch_separables(p['c2r'], x_left, stride=2,
                           res=avg_pool(x_right, k=3, stride=2, pad=1))
    c3 = avg_pool(c0, k=3, stride=1, pad=1, res=c1)
    c4 = branch_separables(p['c4l'], c0, stride=1, res=mp_right)
    return jnp.concatenate([c1, c2, c3, c4], axis=-1)


# ---------------------------------------------------------------------------
# Deterministic synthetic parameter initialization
# ---------------------------------------------------------------------------
_BN_EPS = 1e-3   # nn.BatchNorm2d(eps=0.001) everywhere in NASNet


class _PInit:
    def __init__(self, key):
        self._key = key
        self._n = 0

    def take(self, shape, scale=0.1):
        self._n += 1
        k = jax.random.fold_in(self._key, self._n)
        return scale * jax.random.normal(k, shape, jnp.float32)


def _init_bn(pi, c):
    gamma = 1.0 + pi.take((c,))
    beta = pi.take((c,))
    running_mean = pi.take((c,))
    running_var = 1.0 + jnp.abs(pi.take((c,)))
    scale = gamma / jnp.sqrt(running_var + _BN_EPS)
    shift = beta - running_mean * scale
    return scale, shift


def _init_conv1x1_bn(pi, cin, cout):
    s, t = _init_bn(pi, cout)
    return {'w': pi.take((cin, cout)), 'scale': s, 'shift': t}


def _init_branch_sep(pi, cin, cout, k, stem=False):
    mid = cout if stem else cin
    s1, t1 = _init_bn(pi, mid)
    s2, t2 = _init_bn(pi, cout)
    return {'dw1': pi.take((k, k, cin)), 'pw1': pi.take((cin, mid)),
            'bn1_s': s1, 'bn1_t': t1,
            'dw2': pi.take((k, k, mid)), 'pw2': pi.take((mid, cout)),
            'bn2_s': s2, 'bn2_t': t2}


def _init_path(pi, cin, half):
    s, t = _init_bn(pi, 2 * half)
    return {'p1_w': pi.take((cin, half)), 'p2_w': pi.take((cin, half)),
            's_a': s[:half], 't_a': t[:half], 's_b': s[half:], 't_b': t[half:]}


def _init_cell_stem0(pi, stem_filters, nf):
    return {'conv_1x1': _init_conv1x1_bn(pi, stem_filters, nf),
            'c0l': _init_branch_sep(pi, nf, nf, 5),
            'c0r': _init_branch_sep(pi, stem_filters, nf, 7, stem=True),
            'c1r': _init_branch_sep(pi, stem_filters, nf, 7, stem=True),
            'c2r': _init_branch_sep(pi, stem_filters, nf, 5, stem=True),
            'c4l': _init_branch_sep(pi, nf, nf, 3)}


def _init_cell_stem1(pi, stem_filters, nf):
    return {'conv_1x1': _init_conv1x1_bn(pi, 2 * nf, nf),
            'path': _init_path(pi, stem_filters, nf // 2),
            'c0l': _init_branch_sep(pi, nf, nf, 5),
            'c0r': _init_branch_sep(pi, nf, nf, 7),
            'c1r': _init_branch_sep(pi, nf, nf, 7),
            'c2r': _init_branch_sep(pi, nf, nf, 5),
            'c4l': _init_branch_sep(pi, nf, nf, 3)}


def _init_first_cell(pi, in_l, out_l, in_r, out_r):
    return {'conv_1x1': _init_conv1x1_bn(pi, in_r, out_r),
            'path': _init_path(pi, in_l, out_l),
            'c0l': _init_branch_sep(pi, out_r, out_r, 5),
            'c0r': _init_branch_sep(pi, out_r, out_r, 3),
            'c1l': _init_branch_sep(pi, out_r, out_r, 5),
            'c1r': _init_branch_sep(pi, out_r, out_r, 3),
            'c4l': _init_branch_sep(pi, out_r, out_r, 3)}


def _init_normal_cell(pi, in_l, out_l, in_r, out_r):
    return {'conv_prev_1x1': _init_conv1x1_bn(pi, in_l, out_l),
            'conv_1x1': _init_conv1x1_bn(pi, in_r, out_r),
            'c0l': _init_branch_sep(pi, out_r, out_r, 5),
            'c0r': _init_branch_sep(pi, out_l, out_l, 3),
            'c1l': _init_branch_sep(pi, out_l, out_l, 5),
            'c1r': _init_branch_sep(pi, out_l, out_l, 3),
            'c4l': _init_branch_sep(pi, out_r, out_r, 3)}


def _init_reduction_cell(pi, in_l, out_l, in_r, out_r):
    return {'conv_prev_1x1': _init_conv1x1_bn(pi, in_l, out_l),
            'conv_1x1': _init_conv1x1_bn(pi, in_r, out_r),
            'c0l': _init_branch_sep(pi, out_r, out_r, 5),
            'c0r': _init_branch_sep(pi, out_r, out_r, 7),
            'c1r': _init_branch_sep(pi, out_r, out_r, 7),
            'c2r': _init_branch_sep(pi, out_r, out_r, 5),
            'c4l': _init_branch_sep(pi, out_r, out_r, 3)}


def init_nasnet_params(key, num_classes, input_channel=3,
                       stem_filters=96, penultimate_filters=4032):
    pi = _PInit(key)
    f = penultimate_filters // 24            # "filters" in the reference model
    P = {}
    c0s, c0t = _init_bn(pi, stem_filters)
    P['conv0'] = {'w': pi.take((3, 3, input_channel, stem_filters)),
                  'scale': c0s, 'shift': c0t}
    P['stem0'] = _init_cell_stem0(pi, stem_filters, f // 4)
    P['stem1'] = _init_cell_stem1(pi, stem_filters, f // 2)
    P['cell_0'] = _init_first_cell(pi, f, f // 2, 2 * f, f)
    P['cell_1'] = _init_normal_cell(pi, 2 * f, f, 6 * f, f)
    for i in range(2, 6):
        P[f'cell_{i}'] = _init_normal_cell(pi, 6 * f, f, 6 * f, f)
    P['red_0'] = _init_reduction_cell(pi, 6 * f, 2 * f, 6 * f, 2 * f)
    P['cell_6'] = _init_first_cell(pi, 6 * f, f, 8 * f, 2 * f)
    P['cell_7'] = _init_normal_cell(pi, 8 * f, 2 * f, 12 * f, 2 * f)
    for i in range(8, 12):
        P[f'cell_{i}'] = _init_normal_cell(pi, 12 * f, 2 * f, 12 * f, 2 * f)
    P['red_1'] = _init_reduction_cell(pi, 12 * f, 4 * f, 12 * f, 4 * f)
    P['cell_12'] = _init_first_cell(pi, 12 * f, 2 * f, 16 * f, 4 * f)
    P['cell_13'] = _init_normal_cell(pi, 16 * f, 4 * f, 24 * f, 4 * f)
    for i in range(14, 18):
        P[f'cell_{i}'] = _init_normal_cell(pi, 24 * f, 4 * f, 24 * f, 4 * f)
    P['fc'] = {'w': pi.take((24 * f, num_classes)),
               'b': pi.take((num_classes,))}
    return P


# ---------------------------------------------------------------------------
# Full forward pass (NASNetALarge.forward)
# ---------------------------------------------------------------------------
def nasnet_forward(params, x_nchw):
    """x_nchw: (N, C, H, W) float32 (PyTorch layout). Returns (N, classes)."""
    x = jnp.transpose(x_nchw, (0, 2, 3, 1)).astype(jnp.bfloat16)  # NCHW->NHWC

    p0 = params['conv0']
    x_conv0 = conv2d_bn(x, p0['w'], p0['scale'], p0['shift'], stride=2, pad=0)
    x_stem_0 = cell_stem0(params['stem0'], x_conv0)
    x_stem_1 = cell_stem1(params['stem1'], x_conv0, x_stem_0)

    x_cell_0 = first_cell(params['cell_0'], x_stem_1, x_stem_0)
    x_cell_1 = normal_cell(params['cell_1'], x_cell_0, x_stem_1)
    x_cell_2 = normal_cell(params['cell_2'], x_cell_1, x_cell_0)
    x_cell_3 = normal_cell(params['cell_3'], x_cell_2, x_cell_1)
    x_cell_4 = normal_cell(params['cell_4'], x_cell_3, x_cell_2)
    x_cell_5 = normal_cell(params['cell_5'], x_cell_4, x_cell_3)

    x_red_0 = reduction_cell0(params['red_0'], x_cell_5, x_cell_4)

    x_cell_6 = first_cell(params['cell_6'], x_red_0, x_cell_4)
    x_cell_7 = normal_cell(params['cell_7'], x_cell_6, x_red_0)
    x_cell_8 = normal_cell(params['cell_8'], x_cell_7, x_cell_6)
    x_cell_9 = normal_cell(params['cell_9'], x_cell_8, x_cell_7)
    x_cell_10 = normal_cell(params['cell_10'], x_cell_9, x_cell_8)
    x_cell_11 = normal_cell(params['cell_11'], x_cell_10, x_cell_9)

    x_red_1 = reduction_cell1(params['red_1'], x_cell_11, x_cell_10)

    x_cell_12 = first_cell(params['cell_12'], x_red_1, x_cell_10)
    x_cell_13 = normal_cell(params['cell_13'], x_cell_12, x_red_1)
    x_cell_14 = normal_cell(params['cell_14'], x_cell_13, x_cell_12)
    x_cell_15 = normal_cell(params['cell_15'], x_cell_14, x_cell_13)
    x_cell_16 = normal_cell(params['cell_16'], x_cell_15, x_cell_14)
    x_cell_17 = normal_cell(params['cell_17'], x_cell_16, x_cell_15)

    # logits: ReLU -> AvgPool2d(spatial) -> flatten -> Dropout -> Linear
    # (leading ReLU fused into the pooling kernel; pool == global average)
    n, h, w, c = x_cell_17.shape
    pooled = avg_pool(x_cell_17, k=h, stride=1, pad=0, relu_in=True)
    feat = pooled.reshape(n, c)
    # TODO(synk): Dropout(p=0.5) is identity in eval mode; training-mode RNG dropout not implemented.
    fc = params['fc']
    ones = jnp.ones((fc['w'].shape[1],), jnp.float32)
    logits = matmul_affine(feat, fc['w'], ones, fc['b'])
    return logits.astype(jnp.float32)


if __name__ == "__main__":
    key = jax.random.PRNGKey(0)
    num_classes = 10
    input_channel = 3
    # Small synthetic configuration.  The real NASNet-A-Large uses
    # stem_filters=96, penultimate_filters=4032 and 331x331 inputs; the cell
    # topology / wiring here is identical, only widths/resolution are scaled.
    params = init_nasnet_params(jax.random.fold_in(key, 1), num_classes,
                                input_channel,
                                stem_filters=8, penultimate_filters=192)
    x = jax.random.normal(jax.random.fold_in(key, 2),
                          (2, input_channel, 31, 31), jnp.float32)
    logits = nasnet_forward(params, x)
    logits = jax.block_until_ready(logits)
    assert logits.shape == (2, num_classes)
    assert bool(jnp.all(jnp.isfinite(logits)))
    print("KERNEL_OK")
</pallas_src>

<mosaic_0001>
module attributes {stable_mosaic.version = 11 : i64} {
  func.func @_matmul_affine_kernel(%arg0: i32, %arg1: i32, %arg2: memref<450x27xbf16, #tpu.memory_space<vmem>>, %arg3: memref<27x128xbf16, #tpu.memory_space<vmem>>, %arg4: memref<1x128xf32, #tpu.memory_space<vmem>>, %arg5: memref<1x128xf32, #tpu.memory_space<vmem>>, %arg6: memref<450x128xbf16, #tpu.memory_space<vmem>>) attributes {dimension_semantics = [#tpu.dimension_semantics<parallel>, #tpu.dimension_semantics<parallel>], iteration_bounds = array<i64: 1, 1>, scalar_prefetch = 0 : i64, scratch_operands = 0 : i64, tpu.core_type = #tpu.core_type<tc>, window_params = [{transform_indices = @transform_0, window_bounds = array<i64: 450, 27>}, {transform_indices = @transform_1, window_bounds = array<i64: 27, 128>}, {transform_indices = @transform_2, window_bounds = array<i64: 1, 128>}, {transform_indices = @transform_3, window_bounds = array<i64: 1, 128>}, {transform_indices = @transform_4, window_bounds = array<i64: 450, 128>}]} {
    %c0 = arith.constant 0 : index
    %c0_0 = arith.constant 0 : index
    %0 = vector.load %arg2[%c0, %c0_0] : memref<450x27xbf16, #tpu.memory_space<vmem>>, vector<450x27xbf16>
    %c0_1 = arith.constant 0 : index
    %c0_2 = arith.constant 0 : index
    %1 = vector.load %arg3[%c0_1, %c0_2] : memref<27x128xbf16, #tpu.memory_space<vmem>>, vector<27x128xbf16>
    %cst = arith.constant dense<0.000000e+00> : vector<450x128xf32>
    %2 = tpu.matmul %0, %1, %cst {dimension_numbers = #tpu.dot_dimension_numbers<[1], [0], [0], [1], [0, 0, 1, 1], [], []>} : vector<450x27xbf16>, vector<27x128xbf16>, vector<450x128xf32> -> vector<450x128xf32>
    %c0_3 = arith.constant 0 : index
    %c0_4 = arith.constant 0 : index
    %3 = vector.load %arg4[%c0_3, %c0_4] : memref<1x128xf32, #tpu.memory_space<vmem>>, vector<1x128xf32>
    %4 = vector.broadcast %3 : vector<1x128xf32> to vector<450x128xf32>
    %5 = arith.mulf %2, %4 : vector<450x128xf32>
    %c0_5 = arith.constant 0 : index
    %c0_6 = arith.constant 0 : index
    %6 = vector.load %arg5[%c0_5, %c0_6] : memref<1x128xf32, #tpu.memory_space<vmem>>, vector<1x128xf32>
    %7 = vector.broadcast %6 : vector<1x128xf32> to vector<450x128xf32>
    %8 = arith.addf %5, %7 : vector<450x128xf32>
    %9 = arith.truncf %8 : vector<450x128xf32> to vector<450x128xbf16>
    %c0_7 = arith.constant 0 : index
    %c0_8 = arith.constant 0 : index
    %10 = vector.load %arg6[%c0_7, %c0_8] : memref<450x128xbf16, #tpu.memory_space<vmem>>, vector<450x128xbf16>
    tpu.vector_store %arg6[%c0_7, %c0_8], %9 {strides = array<i32>} : memref<450x128xbf16, #tpu.memory_space<vmem>>, vector<450x128xbf16>,
    return
  }
  func.func @transform_0(%arg0: i32, %arg1: i32) -> (i32, i32) {
    %c0_i32 = arith.constant 0 : i32
    %c0_i32_0 = arith.constant 0 : i32
    return %arg0, %c0_i32 : i32, i32
  }
  func.func @transform_1(%arg0: i32, %arg1: i32) -> (i32, i32) {
    %c0_i32 = arith.constant 0 : i32
    %c0_i32_0 = arith.constant 0 : i32
    return %c0_i32, %arg1 : i32, i32
  }
  func.func @transform_2(%arg0: i32, %arg1: i32) -> (i32, i32) {
    %c0_i32 = arith.constant 0 : i32
    %c0_i32_0 = arith.constant 0 : i32
    return %c0_i32, %arg1 : i32, i32
  }
  func.func @transform_3(%arg0: i32, %arg1: i32) -> (i32, i32) {
    %c0_i32 = arith.constant 0 : i32
    %c0_i32_0 = arith.constant 0 : i32
    return %c0_i32, %arg1 : i32, i32
  }
  func.func @transform_4(%arg0: i32, %arg1: i32) -> (i32, i32) {
    %c0_i32 = arith.constant 0 : i32
    return %arg0, %arg1 : i32, i32
  }
}

</mosaic_0001>

<bundles_post_ra>
// kernel: matmul_affine.1
= control target key start
LH: loop header
LB: loop body
LE: loop exit
PB: predicated region body
PF: predicated region fallthrough
CT: control target
= control target key end

     0   :  { %vm321_vm0 = vcmask 1044480   ;;  %vm322_vm1 = vcmask 1045504   ;;  %v1542_v0 = vmov 0.0   ;;  %v1543_v2 = vmov 65535   ;;  %s1965_s1 = inlined_call_operand.vmem [shape: bf16[27,128], index: 1, kind: input, shape index: {}]   ;;  %s1966_s0 = inlined_call_operand.vmem [shape: bf16[450,27], index: 0, kind: input, shape index: {}]   ;;  %s1967_s2 = inlined_call_operand.vmem [shape: f32[1,128], index: 2, kind: input, shape index: {}]   ;;  %s1968_s3 = inlined_call_operand.vmem [shape: f32[1,128], index: 3, kind: input, shape index: {}]   ;;  %s1969_s4 = inlined_call_operand.vmem [shape: bf16[450,128], index: 4, kind: output, shape index: {}]  }
   0x1   :  { %1384 = vmatprep.subr.bf16.mxu0 %v1542_v0  ;;  %v1511_v1 = vld [vmem:[%s1965_s1] sm:$0xff]   ;;  %v323_v3 = vsel %vm321_vm0, 4294967295, %v1543_v2  ;;  %1504 = vmatprep.subr.bf16.mxu1 %v1542_v0  ;;  %v1512_v4 = vld [vmem:[%s1965_s1 + $0x8] sm:$0x3f]   ;;  %vm1544_vm2 = vmmov 0   ;;  %v1514_v8 = vld [vmem:[%s1966_s0 + $0x78] sm:$0xff]  }
   0x2   :  { %1385 = vmatpush3.bf16.msra.mxu0 %v1511_v1  ;;  %v324_v5 = vsel %vm322_vm1, %v323_v3, 0  ;;  %1506 = vmatpush3.bf16.msra.mxu1 %v1511_v1  ;;  %v1513_v7 = vld [vmem:[%s1966_s0] sm:$0xff]   ;;  %vm233_vm3 = vcmask 220160   ;;  %v1515_v9 = vld [vmem:[%s1966_s0 + $0x8] sm:$0xff]   ;;  %v1517_v11 = vld [vmem:[%s1966_s0 + $0x10] sm:$0xff]  }
   0x3   :  { %1386 = vmatprep.subr.bf16.mxu0 %v1542_v0  ;;  %v326_v6 = vand.u32 %v1512_v4, %v324_v5  ;;  %1388 = vmatprep.mubr.msk.bf16.mxu0 %vm1544_vm2, %v1542_v0  ;;  %v1516_v10 = vld [vmem:[%s1966_s0 + $0x80] sm:$0xff]   ;;  %v1518_v12 = vld [vmem:[%s1966_s0 + $0x88] sm:$0xff]   ;;  %v1519_v13 = vld [vmem:[%s1966_s0 + $0x18] sm:$0xff]  }
   0x4   :  { %1505 = vmatprep.subr.bf16.mxu1 %v1542_v0  ;;  %1448 = vmatprep.mubr.msk.bf16.mxu1 %vm1544_vm2, %v1542_v0  ;;  %v1520_v14 = vld [vmem:[%s1966_s0 + $0x90] sm:$0xff]   ;;  %v1521_v15 = vld [vmem:[%s1966_s0 + $0x20] sm:$0xff]   ;;  %v1522_v16 = vld [vmem:[%s1966_s0 + $0x98] sm:$0xff]  }
   0x5   :  { %v1523_v17 = vld [vmem:[%s1966_s0 + $0x28] sm:$0xff]   ;;  %v1524_v18 = vld [vmem:[%s1966_s0 + $0xa0] sm:$0xff]   ;;  %v1525_v19 = vld [vmem:[%s1966_s0 + $0x30] sm:$0xff]  }
   0x6   :  { %1387 = vmatpush3.bf16.msra.mxu0 %v326_v6  ;;  %1507 = vmatpush3.bf16.msra.mxu1 %v326_v6  ;;  %v1526_v20 = vld [vmem:[%s1966_s0 + $0xa8] sm:$0xff]   ;;  %v1527_v21 = vld [vmem:[%s1966_s0 + $0x38] sm:$0xff]   ;;  %v1528_v22 = vld [vmem:[%s1966_s0 + $0xb0] sm:$0xff]  }
   0x7   :  { %v1529_v23 = vld [vmem:[%s1966_s0 + $0x40] sm:$0xff]   ;;  %v1530_v24 = vld [vmem:[%s1966_s0 + $0xb8] sm:$0xff]   ;;  %v1531_v25 = vld [vmem:[%s1966_s0 + $0x48] sm:$0xff]  }
   0x8   :  { %v1532_v26 = vld [vmem:[%s1966_s0 + $0xc0] sm:$0xff]   ;;  %v1533_v27 = vld [vmem:[%s1966_s0 + $0x50] sm:$0xff]   ;;  %v1534_v28 = vld [vmem:[%s1966_s0 + $0xc8] sm:$0xff]  }
   0x9   :  { %1389 = vmatmul.mubr.msk.bf16.vlgmr.msra.gmra.mrb[0].mxu0 %vm233_vm3, %v1513_v7  ;;  %1449 = vmatmul.mubr.msk.bf16.vlgmr.msra.gmra.mrb[0].mxu1 %vm233_vm3, %v1514_v8  ;;  %v1535_v29 = vld [vmem:[%s1966_s0 + $0x58] sm:$0xff]   ;;  %v1536_v30 = vld [vmem:[%s1966_s0 + $0xd0] sm:$0xff]   ;;  %v1537_v31 = vld [vmem:[%s1966_s0 + $0x60] sm:$0xff]  }
   0xa   :  { %1392 = vmatprep.mubr.msk.bf16.mxu0 %vm1544_vm2, %v1542_v0  ;;  %1452 = vmatprep.mubr.msk.bf16.mxu1 %vm1544_vm2, %v1542_v0  ;;  %v1538_v32 = vld [vmem:[%s1966_s0 + $0xd8] sm:$0xff]   ;;  %v1539_v33 = vld [vmem:[%s1966_s0 + $0x68] sm:$0xff]   ;;  %v1540_v34 = vld [vmem:[%s1966_s0 + $0xe0] ss:$0 sps:$4 sm:$0x11]  }
   0xb   :  { %v1541_v35 = vld [vmem:[%s1966_s0 + $0x70] sm:$0xff]   ;;  %v1757_v36 = vld [vmem:[%s1967_s2] ss:$0 sm:$0xff] }
   0xc   :  { %v1764_v43 = vld [vmem:[%s1968_s3] ss:$0 sm:$0xff] }
  0x11   :  { %1393 = vmatmul.mubr.msk.bf16.gmra.mrb[4].mxu0 %vm233_vm3, %v1515_v9  ;;  %1453 = vmatmul.mubr.msk.bf16.gmra.mrb[4].mxu1 %vm233_vm3, %v1516_v10 }
  0x12   :  { %1396 = vmatprep.mubr.msk.bf16.mxu0 %vm1544_vm2, %v1542_v0  ;;  %1456 = vmatprep.mubr.msk.bf16.mxu1 %vm1544_vm2, %v1542_v0 }
  0x19   :  { %1397 = vmatmul.mubr.msk.bf16.gmra.mrb[8].mxu0 %vm233_vm3, %v1517_v11  ;;  %1457 = vmatmul.mubr.msk.bf16.gmra.mrb[8].mxu1 %vm233_vm3, %v1518_v12 }
  0x1a   :  { %1400 = vmatprep.mubr.msk.bf16.mxu0 %vm1544_vm2, %v1542_v0  ;;  %1460 = vmatprep.mubr.msk.bf16.mxu1 %vm1544_vm2, %v1542_v0 }
  0x21   :  { %1401 = vmatmul.mubr.msk.bf16.gmra.mrb[12].mxu0 %vm233_vm3, %v1519_v13  ;;  %1461 = vmatmul.mubr.msk.bf16.gmra.mrb[12].mxu1 %vm233_vm3, %v1520_v14 }
  0x22   :  { %1404 = vmatprep.mubr.msk.bf16.mxu0 %vm1544_vm2, %v1542_v0  ;;  %1464 = vmatprep.mubr.msk.bf16.mxu1 %vm1544_vm2, %v1542_v0 }
  0x29   :  { %1405 = vmatmul.mubr.msk.bf16.gmra.mrb[16].mxu0 %vm233_vm3, %v1521_v15  ;;  %1465 = vmatmul.mubr.msk.bf16.gmra.mrb[16].mxu1 %vm233_vm3, %v1522_v16 }
  0x2a   :  { %1408 = vmatprep.mubr.msk.bf16.mxu0 %vm1544_vm2, %v1542_v0  ;;  %1468 = vmatprep.mubr.msk.bf16.mxu1 %vm1544_vm2, %v1542_v0 }
  0x31   :  { %1409 = vmatmul.mubr.msk.bf16.gmra.mrb[20].mxu0 %vm233_vm3, %v1523_v17  ;;  %1469 = vmatmul.mubr.msk.bf16.gmra.mrb[20].mxu1 %vm233_vm3, %v1524_v18 }
  0x32   :  { %1412 = vmatprep.mubr.msk.bf16.mxu0 %vm1544_vm2, %v1542_v0  ;;  %1472 = vmatprep.mubr.msk.bf16.mxu1 %vm1544_vm2, %v1542_v0 }
  0x39   :  { %1413 = vmatmul.mubr.msk.bf16.gmra.mrb[24].mxu0 %vm233_vm3, %v1525_v19  ;;  %1473 = vmatmul.mubr.msk.bf16.gmra.mrb[24].mxu1 %vm233_vm3, %v1526_v20 }
  0x3a   :  { %1416 = vmatprep.mubr.msk.bf16.mxu0 %vm1544_vm2, %v1542_v0  ;;  %1476 = vmatprep.mubr.msk.bf16.mxu1 %vm1544_vm2, %v1542_v0 }
  0x41   :  { %1417 = vmatmul.mubr.msk.bf16.gmra.mrb[28].mxu0 %vm233_vm3, %v1527_v21  ;;  %1477 = vmatmul.mubr.msk.bf16.gmra.mrb[28].mxu1 %vm233_vm3, %v1528_v22 }
  0x42   :  { %1420 = vmatprep.mubr.msk.bf16.mxu0 %vm1544_vm2, %v1542_v0  ;;  %1480 = vmatprep.mubr.msk.bf16.mxu1 %vm1544_vm2, %v1542_v0 }
  0x49   :  { %1421 = vmatmul.mubr.msk.bf16.gmra.mrb[32].mxu0 %vm233_vm3, %v1529_v23  ;;  %1481 = vmatmul.mubr.msk.bf16.gmra.mrb[32].mxu1 %vm233_vm3, %v1530_v24 }
  0x4a   :  { %1424 = vmatprep.mubr.msk.bf16.mxu0 %vm1544_vm2, %v1542_v0  ;;  %1484 = vmatprep.mubr.msk.bf16.mxu1 %vm1544_vm2, %v1542_v0 }
  0x51   :  { %1425 = vmatmul.mubr.msk.bf16.gmra.mrb[36].mxu0 %vm233_vm3, %v1531_v25  ;;  %1485 = vmatmul.mubr.msk.bf16.gmra.mrb[36].mxu1 %vm233_vm3, %v1532_v26 }
  0x52   :  { %1428 = vmatprep.mubr.msk.bf16.mxu0 %vm1544_vm2, %v1542_v0  ;;  %1488 = vmatprep.mubr.msk.bf16.mxu1 %vm1544_vm2, %v1542_v0 }
  0x59   :  { %1429 = vmatmul.mubr.msk.bf16.gmra.mrb[40].mxu0 %vm233_vm3, %v1533_v27  ;;  %1489 = vmatmul.mubr.msk.bf16.gmra.mrb[40].mxu1 %vm233_vm3, %v1534_v28 }
  0x5a   :  { %1432 = vmatprep.mubr.msk.bf16.mxu0 %vm1544_vm2, %v1542_v0  ;;  %1492 = vmatprep.mubr.msk.bf16.mxu1 %vm1544_vm2, %v1542_v0 }
  0x61   :  { %1433 = vmatmul.mubr.msk.bf16.gmra.mrb[44].mxu0 %vm233_vm3, %v1535_v29  ;;  %1493 = vmatmul.mubr.msk.bf16.gmra.mrb[44].mxu1 %vm233_vm3, %v1536_v30 }
  0x62   :  { %1436 = vmatprep.mubr.msk.bf16.mxu0 %vm1544_vm2, %v1542_v0  ;;  %1496 = vmatprep.mubr.msk.bf16.mxu1 %vm1544_vm2, %v1542_v0 }
  0x69   :  { %1437 = vmatmul.mubr.msk.bf16.gmra.mrb[48].mxu0 %vm233_vm3, %v1537_v31  ;;  %1497 = vmatmul.mubr.msk.bf16.gmra.mrb[48].mxu1 %vm233_vm3, %v1538_v32 }
  0x6a   :  { %1440 = vmatprep.mubr.msk.bf16.mxu0 %vm1544_vm2, %v1542_v0  ;;  %1500 = vmatprep.mubr.msk.bf16.mxu1 %vm1544_vm2, %v1542_v0 }
  0x71   :  { %1441 = vmatmul.mubr.msk.bf16.gmra.mrb[52].mxu0 %vm233_vm3, %v1539_v33  ;;  %1501 = vmatmul.mubr.msk.bf16.gmra.mrb[52].mxu1 %vm233_vm3, %v1540_v34 }
  0x72   :  { %1444 = vmatprep.mubr.msk.bf16.mxu0 %vm1544_vm2, %v1542_v0 }
  0x79   :  { %1445 = vmatmul.mubr.msk.bf16.gmra.mrb[56].mxu0 %vm233_vm3, %v1541_v35 }
  0xdc   :  { %v362_v37 = vpop.f32.mrb[0].mxu0  ;;  %v482_v38 = vpop.f32.mrb[0].mxu1 }
  0xdd   :  { %v599_v39 = vmul.f32 %v1757_v36, %v362_v37  ;;  %v1390_v40 = vpop.f32.mrb[1].mxu0  ;;  %v629_v41 = vmul.f32 %v1757_v36, %v482_v38  ;;  %v1450_v42 = vpop.f32.mrb[1].mxu1 }
  0xde   :  { %v365_v44 = vpop.f32.mrb[2].mxu0  ;;  %v485_v45 = vpop.f32.mrb[2].mxu1 }
  0xdf   :  { %v600_v46 = vmul.f32 %v1757_v36, %v365_v44  ;;  %v1391_v47 = vpop.f32.mrb[3].mxu0  ;;  %v693_v48 = vadd.f32 %v1764_v43, %v629_v41  ;;  %v630_v49 = vmul.f32 %v1757_v36, %v485_v45  ;;  %v1451_v50 = vpop.f32.mrb[3].mxu1  ;;  %v663_v51 = vadd.f32 %v1764_v43, %v599_v39 }
  0xe1   :  { %v664_v52 = vadd.f32 %v1764_v43, %v600_v46  ;;  %v694_v53 = vadd.f32 %v1764_v43, %v630_v49 }
  0xe3   :  { %v1189_v54 = vpack.c.bf16 %v664_v52, %v663_v51  ;;  %v1264_v55 = vpack.c.bf16 %v694_v53, %v693_v48 }
  0xe4   :  { %v370_v56 = vpop.f32.mrb[4].mxu0  ;;  %v490_v57 = vpop.f32.mrb[4].mxu1 }
  0xe5   :  { %1190 = vst [vmem:[%s1969_s4] sm:$0xff] %v1189_v54   ;;  %v601_v58 = vmul.f32 %v1757_v36, %v370_v56  ;;  %v1394_v59 = vpop.f32.mrb[5].mxu0  ;;  %1340 = vst [vmem:[%s1969_s4 + $0x78] sm:$0xff] %v1264_v55   ;;  %v631_v60 = vmul.f32 %v1757_v36, %v490_v57  ;;  %v1454_v61 = vpop.f32.mrb[5].mxu1 }
  0xe6   :  { %v373_v62 = vpop.f32.mrb[6].mxu0  ;;  %v493_v63 = vpop.f32.mrb[6].mxu1 }
  0xe7   :  { %v602_v0 = vmul.f32 %v1757_v36, %v373_v62  ;;  %v1395_v1 = vpop.f32.mrb[7].mxu0  ;;  %v695_v2 = vadd.f32 %v1764_v43, %v631_v60  ;;  %v632_v3 = vmul.f32 %v1757_v36, %v493_v63  ;;  %v1455_v4 = vpop.f32.mrb[7].mxu1  ;;  %v665_v5 = vadd.f32 %v1764_v43, %v601_v58 }
  0xe9   :  { %v666_v6 = vadd.f32 %v1764_v43, %v602_v0  ;;  %v696_v7 = vadd.f32 %v1764_v43, %v632_v3 }
  0xeb   :  { %v1194_v8 = vpack.c.bf16 %v666_v6, %v665_v5  ;;  %v1269_v9 = vpack.c.bf16 %v696_v7, %v695_v2 }
  0xec   :  { %v378_v10 = vpop.f32.mrb[8].mxu0  ;;  %v498_v11 = vpop.f32.mrb[8].mxu1 }
  0xed   :  { %1326 = vst [vmem:[%s1969_s4 + $0x8] sm:$0xff] %v1194_v8   ;;  %v603_v12 = vmul.f32 %v1757_v36, %v378_v10  ;;  %v1398_v13 = vpop.f32.mrb[9].mxu0  ;;  %1341 = vst [vmem:[%s1969_s4 + $0x80] sm:$0xff] %v1269_v9   ;;  %v633_v14 = vmul.f32 %v1757_v36, %v498_v11  ;;  %v1458_v15 = vpop.f32.mrb[9].mxu1 }
  0xee   :  { %v381_v16 = vpop.f32.mrb[10].mxu0  ;;  %v501_v17 = vpop.f32.mrb[10].mxu1 }
  0xef   :  { %v604_v18 = vmul.f32 %v1757_v36, %v381_v16  ;;  %v1399_v19 = vpop.f32.mrb[11].mxu0  ;;  %v697_v20 = vadd.f32 %v1764_v43, %v633_v14  ;;  %v634_v21 = vmul.f32 %v1757_v36, %v501_v17  ;;  %v1459_v22 = vpop.f32.mrb[11].mxu1  ;;  %v667_v23 = vadd.f32 %v1764_v43, %v603_v12 }
  0xf1   :  { %v668_v24 = vadd.f32 %v1764_v43, %v604_v18  ;;  %v698_v25 = vadd.f32 %v1764_v43, %v634_v21 }
  0xf3   :  { %v1199_v26 = vpack.c.bf16 %v668_v24, %v667_v23  ;;  %v1274_v27 = vpack.c.bf16 %v698_v25, %v697_v20 }
  0xf4   :  { %v386_v28 = vpop.f32.mrb[12].mxu0  ;;  %v506_v29 = vpop.f32.mrb[12].mxu1 }
  0xf5   :  { %1327 = vst [vmem:[%s1969_s4 + $0x10] sm:$0xff] %v1199_v26   ;;  %v605_v30 = vmul.f32 %v1757_v36, %v386_v28  ;;  %v1402_v31 = vpop.f32.mrb[13].mxu0  ;;  %1342 = vst [vmem:[%s1969_s4 + $0x88] sm:$0xff] %v1274_v27   ;;  %v635_v32 = vmul.f32 %v1757_v36, %v506_v29  ;;  %v1462_v33 = vpop.f32.mrb[13].mxu1 }
  0xf6   :  { %v389_v34 = vpop.f32.mrb[14].mxu0  ;;  %v509_v35 = vpop.f32.mrb[14].mxu1 }
  0xf7   :  { %v606_v37 = vmul.f32 %v1757_v36, %v389_v34  ;;  %v1403_v38 = vpop.f32.mrb[15].mxu0  ;;  %v699_v39 = vadd.f32 %v1764_v43, %v635_v32  ;;  %v636_v40 = vmul.f32 %v1757_v36, %v509_v35  ;;  %v1463_v41 = vpop.f32.mrb[15].mxu1  ;;  %v669_v42 = vadd.f32 %v1764_v43, %v605_v30 }
  0xf9   :  { %v670_v44 = vadd.f32 %v1764_v43, %v606_v37  ;;  %v700_v45 = vadd.f32 %v1764_v43, %v636_v40 }
  0xfb   :  { %v1204_v46 = vpack.c.bf16 %v670_v44, %v669_v42  ;;  %v1279_v47 = vpack.c.bf16 %v700_v45, %v699_v39 }
  0xfc   :  { %v394_v48 = vpop.f32.mrb[16].mxu0  ;;  %v514_v49 = vpop.f32.mrb[16].mxu1 }
  0xfd   :  { %1328 = vst [vmem:[%s1969_s4 + $0x18] sm:$0xff] %v1204_v46   ;;  %v607_v50 = vmul.f32 %v1757_v36, %v394_v48  ;;  %v1406_v51 = vpop.f32.mrb[17].mxu0  ;;  %1343 = vst [vmem:[%s1969_s4 + $0x90] sm:$0xff] %v1279_v47   ;;  %v637_v52 = vmul.f32 %v1757_v36, %v514_v49  ;;  %v1466_v53 = vpop.f32.mrb[17].mxu1 }
  0xfe   :  { %v397_v54 = vpop.f32.mrb[18].mxu0  ;;  %v517_v55 = vpop.f32.mrb[18].mxu1 }
  0xff   :  { %v608_v56 = vmul.f32 %v1757_v36, %v397_v54  ;;  %v1407_v57 = vpop.f32.mrb[19].mxu0  ;;  %v701_v58 = vadd.f32 %v1764_v43, %v637_v52  ;;  %v638_v59 = vmul.f32 %v1757_v36, %v517_v55  ;;  %v1467_v60 = vpop.f32.mrb[19].mxu1  ;;  %v671_v61 = vadd.f32 %v1764_v43, %v607_v50 }
 0x101   :  { %v672_v62 = vadd.f32 %v1764_v43, %v608_v56  ;;  %v702_v63 = vadd.f32 %v1764_v43, %v638_v59 }
 0x103   :  { %v1209_v0 = vpack.c.bf16 %v672_v62, %v671_v61  ;;  %v1284_v1 = vpack.c.bf16 %v702_v63, %v701_v58 }
 0x104   :  { %v402_v2 = vpop.f32.mrb[20].mxu0  ;;  %v522_v3 = vpop.f32.mrb[20].mxu1 }
 0x105   :  { %1329 = vst [vmem:[%s1969_s4 + $0x20] sm:$0xff] %v1209_v0   ;;  %v609_v4 = vmul.f32 %v1757_v36, %v402_v2  ;;  %v1410_v5 = vpop.f32.mrb[21].mxu0  ;;  %1344 = vst [vmem:[%s1969_s4 + $0x98] sm:$0xff] %v1284_v1   ;;  %v639_v6 = vmul.f32 %v1757_v36, %v522_v3  ;;  %v1470_v7 = vpop.f32.mrb[21].mxu1 }
 0x106   :  { %v405_v8 = vpop.f32.mrb[22].mxu0  ;;  %v525_v9 = vpop.f32.mrb[22].mxu1 }
 0x107   :  { %v610_v10 = vmul.f32 %v1757_v36, %v405_v8  ;;  %v1411_v11 = vpop.f32.mrb[23].mxu0  ;;  %v703_v12 = vadd.f32 %v1764_v43, %v639_v6  ;;  %v640_v13 = vmul.f32 %v1757_v36, %v525_v9  ;;  %v1471_v14 = vpop.f32.mrb[23].mxu1  ;;  %v673_v15 = vadd.f32 %v1764_v43, %v609_v4 }
 0x109   :  { %v674_v16 = vadd.f32 %v1764_v43, %v610_v10  ;;  %v704_v17 = vadd.f32 %v1764_v43, %v640_v13 }
 0x10b   :  { %v1214_v18 = vpack.c.bf16 %v674_v16, %v673_v15  ;;  %v1289_v19 = vpack.c.bf16 %v704_v17, %v703_v12 }
 0x10c   :  { %v410_v20 = vpop.f32.mrb[24].mxu0  ;;  %v530_v21 = vpop.f32.mrb[24].mxu1 }
 0x10d   :  { %1330 = vst [vmem:[%s1969_s4 + $0x28] sm:$0xff] %v1214_v18   ;;  %v611_v22 = vmul.f32 %v1757_v36, %v410_v20  ;;  %v1414_v23 = vpop.f32.mrb[25].mxu0  ;;  %1345 = vst [vmem:[%s1969_s4 + $0xa0] sm:$0xff] %v1289_v19   ;;  %v641_v24 = vmul.f32 %v1757_v36, %v530_v21  ;;  %v1474_v25 = vpop.f32.mrb[25].mxu1 }
 0x10e   :  { %v413_v26 = vpop.f32.mrb[26].mxu0  ;;  %v533_v27 = vpop.f32.mrb[26].mxu1 }
 0x10f   :  { %v612_v28 = vmul.f32 %v1757_v36, %v413_v26  ;;  %v1415_v29 = vpop.f32.mrb[27].mxu0  ;;  %v705_v30 = vadd.f32 %v1764_v43, %v641_v24  ;;  %v642_v31 = vmul.f32 %v1757_v36, %v533_v27  ;;  %v1475_v32 = vpop.f32.mrb[27].mxu1  ;;  %v675_v33 = vadd.f32 %v1764_v43, %v611_v22 }
 0x111   :  { %v676_v34 = vadd.f32 %v1764_v43, %v612_v28  ;;  %v706_v35 = vadd.f32 %v1764_v43, %v642_v31 }
 0x113   :  { %v1219_v37 = vpack.c.bf16 %v676_v34, %v675_v33  ;;  %v1294_v38 = vpack.c.bf16 %v706_v35, %v705_v30 }
 0x114   :  { %v418_v39 = vpop.f32.mrb[28].mxu0  ;;  %v538_v40 = vpop.f32.mrb[28].mxu1 }
 0x115   :  { %1331 = vst [vmem:[%s1969_s4 + $0x30] sm:$0xff] %v1219_v37   ;;  %v613_v41 = vmul.f32 %v1757_v36, %v418_v39  ;;  %v1418_v42 = vpop.f32.mrb[29].mxu0  ;;  %1346 = vst [vmem:[%s1969_s4 + $0xa8] sm:$0xff] %v1294_v38   ;;  %v643_v44 = vmul.f32 %v1757_v36, %v538_v40  ;;  %v1478_v45 = vpop.f32.mrb[29].mxu1 }
 0x116   :  { %v421_v46 = vpop.f32.mrb[30].mxu0  ;;  %v541_v47 = vpop.f32.mrb[30].mxu1 }
 0x117   :  { %v614_v48 = vmul.f32 %v1757_v36, %v421_v46  ;;  %v1419_v49 = vpop.f32.mrb[31].mxu0  ;;  %v707_v50 = vadd.f32 %v1764_v43, %v643_v44  ;;  %v644_v51 = vmul.f32 %v1757_v36, %v541_v47  ;;  %v1479_v52 = vpop.f32.mrb[31].mxu1  ;;  %v677_v53 = vadd.f32 %v1764_v43, %v613_v41 }
 0x119   :  { %v678_v54 = vadd.f32 %v1764_v43, %v614_v48  ;;  %v708_v55 = vadd.f32 %v1764_v43, %v644_v51 }
 0x11b   :  { %v1224_v56 = vpack.c.bf16 %v678_v54, %v677_v53  ;;  %v1299_v57 = vpack.c.bf16 %v708_v55, %v707_v50 }
 0x11c   :  { %v426_v58 = vpop.f32.mrb[32].mxu0  ;;  %v546_v59 = vpop.f32.mrb[32].mxu1 }
 0x11d   :  { %1332 = vst [vmem:[%s1969_s4 + $0x38] sm:$0xff] %v1224_v56   ;;  %v615_v60 = vmul.f32 %v1757_v36, %v426_v58  ;;  %v1422_v61 = vpop.f32.mrb[33].mxu0  ;;  %1347 = vst [vmem:[%s1969_s4 + $0xb0] sm:$0xff] %v1299_v57   ;;  %v645_v62 = vmul.f32 %v1757_v36, %v546_v59  ;;  %v1482_v63 = vpop.f32.mrb[33].mxu1 }
 0x11e   :  { %v429_v0 = vpop.f32.mrb[34].mxu0  ;;  %v549_v1 = vpop.f32.mrb[34].mxu1 }
 0x11f   :  { %v616_v2 = vmul.f32 %v1757_v36, %v429_v0  ;;  %v1423_v3 = vpop.f32.mrb[35].mxu0  ;;  %v709_v4 = vadd.f32 %v1764_v43, %v645_v62  ;;  %v646_v5 = vmul.f32 %v1757_v36, %v549_v1  ;;  %v1483_v6 = vpop.f32.mrb[35].mxu1  ;;  %v679_v7 = vadd.f32 %v1764_v43, %v615_v60 }
 0x121   :  { %v680_v8 = vadd.f32 %v1764_v43, %v616_v2  ;;  %v710_v9 = vadd.f32 %v1764_v43, %v646_v5 }
 0x123   :  { %v1229_v10 = vpack.c.bf16 %v680_v8, %v679_v7  ;;  %v1304_v11 = vpack.c.bf16 %v710_v9, %v709_v4 }
 0x124   :  { %v434_v12 = vpop.f32.mrb[36].mxu0  ;;  %v554_v13 = vpop.f32.mrb[36].mxu1 }
 0x125   :  { %1333 = vst [vmem:[%s1969_s4 + $0x40] sm:$0xff] %v1229_v10   ;;  %v617_v14 = vmul.f32 %v1757_v36, %v434_v12  ;;  %v1426_v15 = vpop.f32.mrb[37].mxu0  ;;  %1348 = vst [vmem:[%s1969_s4 + $0xb8] sm:$0xff] %v1304_v11   ;;  %v647_v16 = vmul.f32 %v1757_v36, %v554_v13  ;;  %v1486_v17 = vpop.f32.mrb[37].mxu1 }
 0x126   :  { %v437_v18 = vpop.f32.mrb[38].mxu0  ;;  %v557_v19 = vpop.f32.mrb[38].mxu1 }
 0x127   :  { %v618_v20 = vmul.f32 %v1757_v36, %v437_v18  ;;  %v1427_v21 = vpop.f32.mrb[39].mxu0  ;;  %v711_v22 = vadd.f32 %v1764_v43, %v647_v16  ;;  %v648_v23 = vmul.f32 %v1757_v36, %v557_v19  ;;  %v1487_v24 = vpop.f32.mrb[39].mxu1  ;;  %v681_v25 = vadd.f32 %v1764_v43, %v617_v14 }
 0x129   :  { %v682_v26 = vadd.f32 %v1764_v43, %v618_v20  ;;  %v712_v27 = vadd.f32 %v1764_v43, %v648_v23 }
 0x12b   :  { %v1234_v28 = vpack.c.bf16 %v682_v26, %v681_v25  ;;  %v1309_v29 = vpack.c.bf16 %v712_v27, %v711_v22 }
 0x12c   :  { %v442_v30 = vpop.f32.mrb[40].mxu0  ;;  %v562_v31 = vpop.f32.mrb[40].mxu1 }
 0x12d   :  { %1334 = vst [vmem:[%s1969_s4 + $0x48] sm:$0xff] %v1234_v28   ;;  %v619_v32 = vmul.f32 %v1757_v36, %v442_v30  ;;  %v1430_v33 = vpop.f32.mrb[41].mxu0  ;;  %1349 = vst [vmem:[%s1969_s4 + $0xc0] sm:$0xff] %v1309_v29   ;;  %v649_v34 = vmul.f32 %v1757_v36, %v562_v31  ;;  %v1490_v35 = vpop.f32.mrb[41].mxu1 }
 0x12e   :  { %v445_v37 = vpop.f32.mrb[42].mxu0  ;;  %v565_v38 = vpop.f32.mrb[42].mxu1 }
 0x12f   :  { %v620_v39 = vmul.f32 %v1757_v36, %v445_v37  ;;  %v1431_v40 = vpop.f32.mrb[43].mxu0  ;;  %v713_v41 = vadd.f32 %v1764_v43, %v649_v34  ;;  %v650_v42 = vmul.f32 %v1757_v36, %v565_v38  ;;  %v1491_v44 = vpop.f32.mrb[43].mxu1  ;;  %v683_v45 = vadd.f32 %v1764_v43, %v619_v32 }
 0x131   :  { %v684_v46 = vadd.f32 %v1764_v43, %v620_v39  ;;  %v714_v47 = vadd.f32 %v1764_v43, %v650_v42 }
 0x133   :  { %v1239_v48 = vpack.c.bf16 %v684_v46, %v683_v45  ;;  %v1314_v49 = vpack.c.bf16 %v714_v47, %v713_v41 }
 0x134   :  { %v450_v50 = vpop.f32.mrb[44].mxu0  ;;  %v570_v51 = vpop.f32.mrb[44].mxu1 }
 0x135   :  { %1335 = vst [vmem:[%s1969_s4 + $0x50] sm:$0xff] %v1239_v48   ;;  %v621_v52 = vmul.f32 %v1757_v36, %v450_v50  ;;  %v1434_v53 = vpop.f32.mrb[45].mxu0  ;;  %1350 = vst [vmem:[%s1969_s4 + $0xc8] sm:$0xff] %v1314_v49   ;;  %v651_v54 = vmul.f32 %v1757_v36, %v570_v51  ;;  %v1494_v55 = vpop.f32.mrb[45].mxu1 }
 0x136   :  { %v453_v56 = vpop.f32.mrb[46].mxu0  ;;  %v573_v57 = vpop.f32.mrb[46].mxu1 }
 0x137   :  { %v622_v58 = vmul.f32 %v1757_v36, %v453_v56  ;;  %v1435_v59 = vpop.f32.mrb[47].mxu0  ;;  %v715_v60 = vadd.f32 %v1764_v43, %v651_v54  ;;  %v652_v61 = vmul.f32 %v1757_v36, %v573_v57  ;;  %v1495_v62 = vpop.f32.mrb[47].mxu1  ;;  %v685_v63 = vadd.f32 %v1764_v43, %v621_v52 }
 0x139   :  { %v686_v0 = vadd.f32 %v1764_v43, %v622_v58  ;;  %v716_v1 = vadd.f32 %v1764_v43, %v652_v61 }
 0x13b   :  { %v1244_v2 = vpack.c.bf16 %v686_v0, %v685_v63  ;;  %v1319_v3 = vpack.c.bf16 %v716_v1, %v715_v60 }
 0x13c   :  { %v458_v4 = vpop.f32.mrb[48].mxu0  ;;  %v578_v5 = vpop.f32.mrb[48].mxu1 }
 0x13d   :  { %1336 = vst [vmem:[%s1969_s4 + $0x58] sm:$0xff] %v1244_v2   ;;  %v623_v6 = vmul.f32 %v1757_v36, %v458_v4  ;;  %v1438_v7 = vpop.f32.mrb[49].mxu0  ;;  %1351 = vst [vmem:[%s1969_s4 + $0xd0] sm:$0xff] %v1319_v3   ;;  %v653_v8 = vmul.f32 %v1757_v36, %v578_v5  ;;  %v1498_v9 = vpop.f32.mrb[49].mxu1 }
 0x13e   :  { %v461_v10 = vpop.f32.mrb[50].mxu0  ;;  %v581_v11 = vpop.f32.mrb[50].mxu1 }
 0x13f   :  { %v624_v12 = vmul.f32 %v1757_v36, %v461_v10  ;;  %v1439_v13 = vpop.f32.mrb[51].mxu0  ;;  %v717_v14 = vadd.f32 %v1764_v43, %v653_v8  ;;  %v654_v15 = vmul.f32 %v1757_v36, %v581_v11  ;;  %v1499_v16 = vpop.f32.mrb[51].mxu1  ;;  %v687_v17 = vadd.f32 %v1764_v43, %v623_v6 }
 0x141   :  { %v688_v18 = vadd.f32 %v1764_v43, %v624_v12  ;;  %v718_v19 = vadd.f32 %v1764_v43, %v654_v15 }
 0x143   :  { %v1249_v20 = vpack.c.bf16 %v688_v18, %v687_v17  ;;  %v1324_v21 = vpack.c.bf16 %v718_v19, %v717_v14 }
 0x144   :  { %v466_v22 = vpop.f32.mrb[52].mxu0  ;;  %v586_v23 = vpop.f32.mrb[52].mxu1 }
 0x145   :  { %1337 = vst [vmem:[%s1969_s4 + $0x60] sm:$0xff] %v1249_v20   ;;  %v625_v24 = vmul.f32 %v1757_v36, %v466_v22  ;;  %v1442_v25 = vpop.f32.mrb[53].mxu0  ;;  %1352 = vst [vmem:[%s1969_s4 + $0xd8] sm:$0xff] %v1324_v21   ;;  %v655_v26 = vmul.f32 %v1757_v36, %v586_v23  ;;  %v1502_v27 = vpop.f32.mrb[53].mxu1 }
 0x146   :  { %v469_v28 = vpop.f32.mrb[54].mxu0  ;;  %v589_v29 = vpop.f32.mrb[54].mxu1 }
 0x147   :  { %v626_v30 = vmul.f32 %v1757_v36, %v469_v28  ;;  %v1443_v31 = vpop.f32.mrb[55].mxu0  ;;  %v719_v32 = vadd.f32 %v1764_v43, %v655_v26  ;;  %v1503_v33 = vpop.f32.mrb[55].mxu1  ;;  %v689_v34 = vadd.f32 %v1764_v43, %v625_v24 }
 0x149   :  { %v690_v35 = vadd.f32 %v1764_v43, %v626_v30  ;;  %v1185_v37 = vpack.c.bf16 %v719_v32, %v719_v32 }
 0x14b   :  { %v1254_v38 = vpack.c.bf16 %v690_v35, %v689_v34  ;;  %1005 = vst [vmem:[%s1969_s4 + $0xe0] sm:$0x1] %v1185_v37 }
 0x14c   :  { %v474_v39 = vpop.f32.mrb[56].mxu0 }
 0x14d   :  { %1338 = vst [vmem:[%s1969_s4 + $0x68] sm:$0xff] %v1254_v38   ;;  %v627_v40 = vmul.f32 %v1757_v36, %v474_v39  ;;  %v1446_v41 = vpop.f32.mrb[57].mxu0 }
 0x14e   :  { %v477_v42 = vpop.f32.mrb[58].mxu0 }
 0x14f   :  { %v628_v44 = vmul.f32 %v1757_v36, %v477_v42  ;;  %v1447_v45 = vpop.f32.mrb[59].mxu0  ;;  %v691_v46 = vadd.f32 %v1764_v43, %v627_v40 }
 0x151   :  { %v692_v47 = vadd.f32 %v1764_v43, %v628_v44 }
 0x153   :  { %v1259_v48 = vpack.c.bf16 %v692_v47, %v691_v46 }
 0x155   :  { %1339 = vst [vmem:[%s1969_s4 + $0x70] sm:$0xff] %v1259_v48  }

</bundles_post_ra>
